<compile_context>
chip_gen: v5e
topology: v5e:2x2
jax: 0.10.0
libtpu: 0.0.40
codegen_flags: <defaults>
</compile_context>

<pallas_src>
import functools

import jax
import jax.numpy as jnp
from jax.experimental import pallas as pl
from jax.experimental.pallas import tpu as pltpu


NEG_SLOPE = 0.01   # PyTorch LeakyReLU default
LANES = 128        # TPU lane width; every feature dim is padded to this in the weight slab
N_LAYERS = 10      # 5 target + 5 model linears


def _leaky_relu(x):
    return jnp.where(x > 0, x, NEG_SLOPE * x)


def _round_up(x, m):
    return ((x + m - 1) // m) * m


# --------------------------------------------------------------------------- #
# Kernel: one batch tile, all 10 layers fused.                                 #
# --------------------------------------------------------------------------- #
def _rnd_forward_kernel(x_ref, w_ref, b_ref, out_ref, *, d, a):
    # x_ref   : (TB, IN_W) f32   -- state | action | zeros   (IN_W <= 128)
    # w_ref   : (10, 128, 128) bf16, stored (in, out), zero-padded
    # b_ref   : (10, 128)      f32, zero-padded
    # out_ref : (TB, D)        f32
    x = x_ref[...]
    in_w = x.shape[1]
    xb = x.astype(jnp.bfloat16)

    # Action-only copy of the narrow input (zero everywhere but lanes [d, d+a)).
    lane = jax.lax.broadcasted_iota(jnp.int32, x.shape, 1)
    x_act = jnp.where((lane >= d) & (lane < d + a), x, 0.0).astype(jnp.bfloat16)

    def layer(h, i, activate):
        y = jnp.dot(h.astype(jnp.bfloat16), w_ref[i],
                    preferred_element_type=jnp.float32) + b_ref[i]
        return _leaky_relu(y) if activate else y

    # ---- target (encoder) MLP: layers 0..4 ----
    # Layer 0 contracts only the IN_W real lanes; W0's padded rows beyond the
    # state dim are zero, so the action lanes feed zero weight rows (harmless).
    h = _leaky_relu(jnp.dot(xb, w_ref[0][:in_w, :],
                            preferred_element_type=jnp.float32) + b_ref[0])
    for i in range(1, 4):
        h = layer(h, i, True)
    enc = layer(h, 4, False)     # enc lanes [d, 128) are exactly 0 (packing invariant)

    # ---- model MLP on concat([enc, action]): layers 5..9 ----
    # Folded concat:  concat([enc, action]) @ W5  ==  enc @ W5 + action @ W5[d:d+a, :]
    y5 = (jnp.dot(enc.astype(jnp.bfloat16), w_ref[5],
                  preferred_element_type=jnp.float32)
          + jnp.dot(x_act, w_ref[5][:in_w, :],
                    preferred_element_type=jnp.float32)
          + b_ref[5])
    h = _leaky_relu(y5)
    for i in range(6, 9):
        h = layer(h, i, True)
    out = layer(h, 9, False)

    out_ref[...] = out[:, :out_ref.shape[1]]   # narrow (D-lane) store


# --------------------------------------------------------------------------- #
# Wrapper                                                                      #
# --------------------------------------------------------------------------- #
@jax.jit
def rnd_forward(state, action, w_stack, b_stack):
    """Fused RND forward model (robotic arch) via one Pallas call.

    state : (B, D) f32, action : (B, A) f32
    w_stack : (10, 128, 128) bf16, b_stack : (10, 128) f32 (see pack_params).
    Returns (B, D) f32.
    """
    B, D = state.shape
    A = action.shape[1]
    assert D + A <= LANES, "feature dims must fit one 128-lane tile"

    # ---- batch tiling ----
    TB_MAX = 1024
    if B <= 8:
        TB = 8
    else:
        # >= 2 tiles so the "parallel" batch axis can split across v7x's 2 TCs.
        TB = min(TB_MAX, _round_up((B + 1) // 2, 8))
    B_pad = _round_up(B, TB)
    grid = (B_pad // TB,)

    # ---- narrow packed input: state | action | zeros (one cheap concat + pad) ----
    DA = D + A
    IN_W = min(LANES, _round_up(DA, 32))
    x_in = jnp.concatenate([state, action], axis=-1)           # (B, D+A)
    x_in = jnp.pad(x_in, ((0, B_pad - B), (0, IN_W - DA)))      # (B_pad, IN_W)

    out = pl.pallas_call(
        functools.partial(_rnd_forward_kernel, d=D, a=A),
        out_shape=jax.ShapeDtypeStruct((B_pad, D), jnp.float32),
        grid_spec=pltpu.PrefetchScalarGridSpec(
            num_scalar_prefetch=0,
            grid=grid,
            in_specs=[
                pl.BlockSpec((TB, IN_W), lambda i: (i, 0)),                   # packed input tile
                pl.BlockSpec((N_LAYERS, LANES, LANES), lambda i: (0, 0, 0)),  # resident weights
                pl.BlockSpec((N_LAYERS, LANES), lambda i: (0, 0)),            # resident biases
            ],
            out_specs=pl.BlockSpec((TB, D), lambda i: (i, 0)),
        ),
        compiler_params=pltpu.CompilerParams(
            dimension_semantics=("parallel",)),
    )(x_in, w_stack, b_stack)

    return out[:B]


# --------------------------------------------------------------------------- #
# Parameters                                                                   #
# --------------------------------------------------------------------------- #
def make_params(key, input_dim, action_dim, h1, h2):
    """Deterministic synthetic params in the module's natural layout.

    Returns (target_layers, model_layers): each a list of 5 (W, b) pairs with
    W stored (in, out) and b stored (out,).
    """
    def lin(k, fan_in, fan_out, scale=None):
        kw, kb = jax.random.split(k)
        s = scale if scale is not None else (1.0 / jnp.sqrt(fan_in))
        w = jax.random.uniform(kw, (fan_in, fan_out), jnp.float32, -s, s)
        b = jax.random.uniform(kb, (fan_out,), jnp.float32, -s, s)
        return w, b

    keys = jax.random.split(key, 10)
    target_layers = [
        lin(keys[0], input_dim, h1),
        lin(keys[1], h1, h1),
        lin(keys[2], h1, h2),
        lin(keys[3], h2, h2),
        lin(keys[4], h2, input_dim),
    ]
    model_layers = [
        lin(keys[5], input_dim + action_dim, h1),
        lin(keys[6], h1, h1),
        lin(keys[7], h1, h2),
        lin(keys[8], h2, h2),
        lin(keys[9], h2, input_dim, scale=0.3),   # mimics uniform_(-0.3, 0.3)
    ]
    return target_layers, model_layers


def pack_params(target_layers, model_layers):
    """Host-side (one-time) packing: zero-pad every layer to (128,128)/(128,) and
    stack into one bf16 weight slab + one f32 bias slab (2 kernel operands total).

    KERNEL INVARIANT: padding MUST be exactly zero. The kernel relies on
      * W_target[0] rows beyond the state dim being 0 (action lanes in the packed
        input feed zero rows), and
      * W_target[4] output columns / b_target[4] beyond D being 0 (so enc lanes
        [D,128) are exactly 0, which makes the folded-concat layer-5 math exact).
    """
    ws, bs = [], []
    for w, b in list(target_layers) + list(model_layers):
        fin, fout = w.shape
        wp = jnp.zeros((LANES, LANES), jnp.float32).at[:fin, :fout].set(w)
        bp = jnp.zeros((LANES,), jnp.float32).at[:fout].set(b)
        ws.append(wp)
        bs.append(bp)
    w_stack = jnp.stack(ws).astype(jnp.bfloat16)   # (10, 128, 128) bf16
    b_stack = jnp.stack(bs)                        # (10, 128)      f32
    return w_stack, b_stack


# --------------------------------------------------------------------------- #
# References (for validation)                                                  #
# --------------------------------------------------------------------------- #
def rnd_forward_ref_f32(state, action, target_layers, model_layers):
    """Pure-JAX f32 reference of the original module semantics."""
    h = state
    for w, b in target_layers[:-1]:
        h = _leaky_relu(h @ w + b)
    w, b = target_layers[-1]
    enc = h @ w + b
    x = jnp.concatenate([enc, action], axis=-1)
    h = x
    for w, b in model_layers[:-1]:
        h = _leaky_relu(h @ w + b)
    w, b = model_layers[-1]
    return h @ w + b


def rnd_forward_ref_packed(state, action, w_stack, b_stack):
    """Pure-JAX reference mirroring the kernel's packed/bf16 numerics exactly."""
    B, D = state.shape
    A = action.shape[1]
    DA = D + A
    IN_W = min(LANES, _round_up(DA, 32))

    x = jnp.zeros((B, IN_W), jnp.float32).at[:, :D].set(state).at[:, D:DA].set(action)
    lane = jnp.arange(IN_W)[None, :]
    x_act = jnp.where((lane >= D) & (lane < DA), x, 0.0)

    def wide(h, i, activate):
        y = jnp.dot(h.astype(jnp.bfloat16), w_stack[i],
                    preferred_element_type=jnp.float32) + b_stack[i]
        return _leaky_relu(y) if activate else y

    def narrow_dot(h, i):
        return jnp.dot(h.astype(jnp.bfloat16), w_stack[i, :IN_W, :],
                       preferred_element_type=jnp.float32)

    h = _leaky_relu(narrow_dot(x, 0) + b_stack[0])
    for i in range(1, 4):
        h = wide(h, i, True)
    enc = wide(h, 4, False)

    y5 = (jnp.dot(enc.astype(jnp.bfloat16), w_stack[5],
                  preferred_element_type=jnp.float32)
          + narrow_dot(x_act, 5) + b_stack[5])
    h = _leaky_relu(y5)
    for i in range(6, 9):
        h = wide(h, i, True)
    out = wide(h, 9, False)
    return out[:, :D]


# --------------------------------------------------------------------------- #
if __name__ == "__main__":
    B = 8            # batch
    D = 16           # input_shape (state dim)
    A = 4            # action_dim
    H1, H2 = 64, 32  # config.forward_model_h1 / _h2

    key = jax.random.PRNGKey(0)
    k_state, k_action, k_params = jax.random.split(key, 3)
    state = jax.random.normal(k_state, (B, D), jnp.float32)
    action = jax.random.normal(k_action, (B, A), jnp.float32)

    target_layers, model_layers = make_params(k_params, D, A, H1, H2)
    w_stack, b_stack = pack_params(target_layers, model_layers)   # one-time host packing

    out = rnd_forward(state, action, w_stack, b_stack)
    out = jax.block_until_ready(out)
    assert out.shape == (B, D)

    # Tight check: kernel logic vs a reference using identical packed/bf16 numerics.
    ref_packed = rnd_forward_ref_packed(state, action, w_stack, b_stack)
    assert jnp.allclose(out, ref_packed, atol=1e-3, rtol=1e-3), \
        "Pallas output mismatch vs packed (bf16) reference"

    # Loose sanity check vs the original full-f32 module semantics (bf16 weights quantize).
    ref_f32 = rnd_forward_ref_f32(state, action, target_layers, model_layers)
    assert jnp.allclose(out, ref_f32, atol=5e-2, rtol=5e-2), \
        "Pallas output too far from f32 reference"

    print("KERNEL_OK")
</pallas_src>

<mosaic_0001>
module attributes {stable_mosaic.version = 11 : i64} {
  func.func @_rnd_forward_kernel(%arg0: i32, %arg1: memref<8x32xf32, #tpu.memory_space<vmem>>, %arg2: memref<10x128x128xbf16, #tpu.memory_space<vmem>>, %arg3: memref<10x128xf32, #tpu.memory_space<vmem>>, %arg4: memref<8x16xf32, #tpu.memory_space<vmem>>) attributes {dimension_semantics = [#tpu.dimension_semantics<parallel>], iteration_bounds = array<i64: 1>, scalar_prefetch = 0 : i64, scratch_operands = 0 : i64, tpu.core_type = #tpu.core_type<tc>, window_params = [{transform_indices = @transform_0, window_bounds = array<i64: 8, 32>}, {pipeline_mode = #tpu.pipeline_mode<synchronous>, transform_indices = @transform_1, window_bounds = array<i64: 10, 128, 128>}, {pipeline_mode = #tpu.pipeline_mode<synchronous>, transform_indices = @transform_2, window_bounds = array<i64: 10, 128>}, {transform_indices = @transform_3, window_bounds = array<i64: 8, 16>}]} {
    %c0 = arith.constant 0 : index
    %c0_0 = arith.constant 0 : index
    %0 = vector.load %arg1[%c0, %c0_0] : memref<8x32xf32, #tpu.memory_space<vmem>>, vector<8x32xf32>
    %1 = arith.truncf %0 : vector<8x32xf32> to vector<8x32xbf16>
    %2 = tpu.iota {dimensions = array<i32: 1>} : vector<8x32xi32>
    %c16_i32 = arith.constant 16 : i32
    %3 = vector.broadcast %c16_i32 : i32 to vector<8x32xi32>
    %4 = arith.cmpi sge, %2, %3 : vector<8x32xi32>
    %c20_i32 = arith.constant 20 : i32
    %5 = vector.broadcast %c20_i32 : i32 to vector<8x32xi32>
    %6 = arith.cmpi slt, %2, %5 : vector<8x32xi32>
    %7 = arith.andi %4, %6 : vector<8x32xi1>
    %cst = arith.constant 0.000000e+00 : f32
    %8 = vector.broadcast %cst : f32 to vector<8x32xf32>
    %9 = arith.select %7, %0, %8 : vector<8x32xi1>, vector<8x32xf32>
    %10 = arith.truncf %9 : vector<8x32xf32> to vector<8x32xbf16>
    %c0_1 = arith.constant 0 : index
    %c0_2 = arith.constant 0 : index
    %c0_3 = arith.constant 0 : index
    %11 = vector.load %arg2[%c0_1, %c0_2, %c0_3] : memref<10x128x128xbf16, #tpu.memory_space<vmem>>, vector<1x128x128xbf16>
    %12 = vector.shape_cast %11 : vector<1x128x128xbf16> to vector<128x128xbf16>
    %13 = vector.extract_strided_slice %12 {offsets = [0, 0], sizes = [32, 128], strides = [1, 1]} : vector<128x128xbf16> to vector<32x128xbf16>
    %cst_4 = arith.constant dense<0.000000e+00> : vector<8x128xf32>
    %14 = tpu.matmul %1, %13, %cst_4 {dimension_numbers = #tpu.dot_dimension_numbers<[1], [0], [0], [1], [0, 0, 1, 1], [], []>} : vector<8x32xbf16>, vector<32x128xbf16>, vector<8x128xf32> -> vector<8x128xf32>
    %c0_5 = arith.constant 0 : index
    %c0_6 = arith.constant 0 : index
    %15 = vector.load %arg3[%c0_5, %c0_6] : memref<10x128xf32, #tpu.memory_space<vmem>>, vector<1x128xf32>
    %16 = vector.shape_cast %15 : vector<1x128xf32> to vector<128xf32>
    %17 = vector.shape_cast %16 : vector<128xf32> to vector<1x128xf32>
    %18 = vector.broadcast %17 : vector<1x128xf32> to vector<8x128xf32>
    %19 = arith.addf %14, %18 : vector<8x128xf32>
    %cst_7 = arith.constant 0.000000e+00 : f32
    %20 = vector.broadcast %cst_7 : f32 to vector<8x128xf32>
    %21 = arith.cmpf ogt, %19, %20 : vector<8x128xf32>
    %cst_8 = arith.constant 0.00999999977 : f32
    %22 = vector.broadcast %cst_8 : f32 to vector<8x128xf32>
    %23 = arith.mulf %22, %19 : vector<8x128xf32>
    %24 = arith.select %21, %19, %23 : vector<8x128xi1>, vector<8x128xf32>
    %25 = arith.truncf %24 : vector<8x128xf32> to vector<8x128xbf16>
    %c1 = arith.constant 1 : index
    %c0_9 = arith.constant 0 : index
    %c0_10 = arith.constant 0 : index
    %26 = vector.load %arg2[%c1, %c0_9, %c0_10] : memref<10x128x128xbf16, #tpu.memory_space<vmem>>, vector<1x128x128xbf16>
    %27 = vector.shape_cast %26 : vector<1x128x128xbf16> to vector<128x128xbf16>
    %cst_11 = arith.constant dense<0.000000e+00> : vector<8x128xf32>
    %28 = tpu.matmul %25, %27, %cst_11 {dimension_numbers = #tpu.dot_dimension_numbers<[1], [0], [0], [1], [0, 0, 1, 1], [], []>} : vector<8x128xbf16>, vector<128x128xbf16>, vector<8x128xf32> -> vector<8x128xf32>
    %c1_12 = arith.constant 1 : index
    %c0_13 = arith.constant 0 : index
    %29 = vector.load %arg3[%c1_12, %c0_13] : memref<10x128xf32, #tpu.memory_space<vmem>>, vector<1x128xf32>
    %30 = vector.shape_cast %29 : vector<1x128xf32> to vector<128xf32>
    %31 = vector.shape_cast %30 : vector<128xf32> to vector<1x128xf32>
    %32 = vector.broadcast %31 : vector<1x128xf32> to vector<8x128xf32>
    %33 = arith.addf %28, %32 : vector<8x128xf32>
    %cst_14 = arith.constant 0.000000e+00 : f32
    %34 = vector.broadcast %cst_14 : f32 to vector<8x128xf32>
    %35 = arith.cmpf ogt, %33, %34 : vector<8x128xf32>
    %cst_15 = arith.constant 0.00999999977 : f32
    %36 = vector.broadcast %cst_15 : f32 to vector<8x128xf32>
    %37 = arith.mulf %36, %33 : vector<8x128xf32>
    %38 = arith.select %35, %33, %37 : vector<8x128xi1>, vector<8x128xf32>
    %39 = arith.truncf %38 : vector<8x128xf32> to vector<8x128xbf16>
    %c2 = arith.constant 2 : index
    %c0_16 = arith.constant 0 : index
    %c0_17 = arith.constant 0 : index
    %40 = vector.load %arg2[%c2, %c0_16, %c0_17] : memref<10x128x128xbf16, #tpu.memory_space<vmem>>, vector<1x128x128xbf16>
    %41 = vector.shape_cast %40 : vector<1x128x128xbf16> to vector<128x128xbf16>
    %cst_18 = arith.constant dense<0.000000e+00> : vector<8x128xf32>
    %42 = tpu.matmul %39, %41, %cst_18 {dimension_numbers = #tpu.dot_dimension_numbers<[1], [0], [0], [1], [0, 0, 1, 1], [], []>} : vector<8x128xbf16>, vector<128x128xbf16>, vector<8x128xf32> -> vector<8x128xf32>
    %c2_19 = arith.constant 2 : index
    %c0_20 = arith.constant 0 : index
    %43 = vector.load %arg3[%c2_19, %c0_20] : memref<10x128xf32, #tpu.memory_space<vmem>>, vector<1x128xf32>
    %44 = vector.shape_cast %43 : vector<1x128xf32> to vector<128xf32>
    %45 = vector.shape_cast %44 : vector<128xf32> to vector<1x128xf32>
    %46 = vector.broadcast %45 : vector<1x128xf32> to vector<8x128xf32>
    %47 = arith.addf %42, %46 : vector<8x128xf32>
    %cst_21 = arith.constant 0.000000e+00 : f32
    %48 = vector.broadcast %cst_21 : f32 to vector<8x128xf32>
    %49 = arith.cmpf ogt, %47, %48 : vector<8x128xf32>
    %cst_22 = arith.constant 0.00999999977 : f32
    %50 = vector.broadcast %cst_22 : f32 to vector<8x128xf32>
    %51 = arith.mulf %50, %47 : vector<8x128xf32>
    %52 = arith.select %49, %47, %51 : vector<8x128xi1>, vector<8x128xf32>
    %53 = arith.truncf %52 : vector<8x128xf32> to vector<8x128xbf16>
    %c3 = arith.constant 3 : index
    %c0_23 = arith.constant 0 : index
    %c0_24 = arith.constant 0 : index
    %54 = vector.load %arg2[%c3, %c0_23, %c0_24] : memref<10x128x128xbf16, #tpu.memory_space<vmem>>, vector<1x128x128xbf16>
    %55 = vector.shape_cast %54 : vector<1x128x128xbf16> to vector<128x128xbf16>
    %cst_25 = arith.constant dense<0.000000e+00> : vector<8x128xf32>
    %56 = tpu.matmul %53, %55, %cst_25 {dimension_numbers = #tpu.dot_dimension_numbers<[1], [0], [0], [1], [0, 0, 1, 1], [], []>} : vector<8x128xbf16>, vector<128x128xbf16>, vector<8x128xf32> -> vector<8x128xf32>
    %c3_26 = arith.constant 3 : index
    %c0_27 = arith.constant 0 : index
    %57 = vector.load %arg3[%c3_26, %c0_27] : memref<10x128xf32, #tpu.memory_space<vmem>>, vector<1x128xf32>
    %58 = vector.shape_cast %57 : vector<1x128xf32> to vector<128xf32>
    %59 = vector.shape_cast %58 : vector<128xf32> to vector<1x128xf32>
    %60 = vector.broadcast %59 : vector<1x128xf32> to vector<8x128xf32>
    %61 = arith.addf %56, %60 : vector<8x128xf32>
    %cst_28 = arith.constant 0.000000e+00 : f32
    %62 = vector.broadcast %cst_28 : f32 to vector<8x128xf32>
    %63 = arith.cmpf ogt, %61, %62 : vector<8x128xf32>
    %cst_29 = arith.constant 0.00999999977 : f32
    %64 = vector.broadcast %cst_29 : f32 to vector<8x128xf32>
    %65 = arith.mulf %64, %61 : vector<8x128xf32>
    %66 = arith.select %63, %61, %65 : vector<8x128xi1>, vector<8x128xf32>
    %67 = arith.truncf %66 : vector<8x128xf32> to vector<8x128xbf16>
    %c4 = arith.constant 4 : index
    %c0_30 = arith.constant 0 : index
    %c0_31 = arith.constant 0 : index
    %68 = vector.load %arg2[%c4, %c0_30, %c0_31] : memref<10x128x128xbf16, #tpu.memory_space<vmem>>, vector<1x128x128xbf16>
    %69 = vector.shape_cast %68 : vector<1x128x128xbf16> to vector<128x128xbf16>
    %cst_32 = arith.constant dense<0.000000e+00> : vector<8x128xf32>
    %70 = tpu.matmul %67, %69, %cst_32 {dimension_numbers = #tpu.dot_dimension_numbers<[1], [0], [0], [1], [0, 0, 1, 1], [], []>} : vector<8x128xbf16>, vector<128x128xbf16>, vector<8x128xf32> -> vector<8x128xf32>
    %c4_33 = arith.constant 4 : index
    %c0_34 = arith.constant 0 : index
    %71 = vector.load %arg3[%c4_33, %c0_34] : memref<10x128xf32, #tpu.memory_space<vmem>>, vector<1x128xf32>
    %72 = vector.shape_cast %71 : vector<1x128xf32> to vector<128xf32>
    %73 = vector.shape_cast %72 : vector<128xf32> to vector<1x128xf32>
    %74 = vector.broadcast %73 : vector<1x128xf32> to vector<8x128xf32>
    %75 = arith.addf %70, %74 : vector<8x128xf32>
    %76 = arith.truncf %75 : vector<8x128xf32> to vector<8x128xbf16>
    %c5 = arith.constant 5 : index
    %c0_35 = arith.constant 0 : index
    %c0_36 = arith.constant 0 : index
    %77 = vector.load %arg2[%c5, %c0_35, %c0_36] : memref<10x128x128xbf16, #tpu.memory_space<vmem>>, vector<1x128x128xbf16>
    %78 = vector.shape_cast %77 : vector<1x128x128xbf16> to vector<128x128xbf16>
    %cst_37 = arith.constant dense<0.000000e+00> : vector<8x128xf32>
    %79 = tpu.matmul %76, %78, %cst_37 {dimension_numbers = #tpu.dot_dimension_numbers<[1], [0], [0], [1], [0, 0, 1, 1], [], []>} : vector<8x128xbf16>, vector<128x128xbf16>, vector<8x128xf32> -> vector<8x128xf32>
    %c5_38 = arith.constant 5 : index
    %c0_39 = arith.constant 0 : index
    %c0_40 = arith.constant 0 : index
    %80 = vector.load %arg2[%c5_38, %c0_39, %c0_40] : memref<10x128x128xbf16, #tpu.memory_space<vmem>>, vector<1x128x128xbf16>
    %81 = vector.shape_cast %80 : vector<1x128x128xbf16> to vector<128x128xbf16>
    %82 = vector.extract_strided_slice %81 {offsets = [0, 0], sizes = [32, 128], strides = [1, 1]} : vector<128x128xbf16> to vector<32x128xbf16>
    %cst_41 = arith.constant dense<0.000000e+00> : vector<8x128xf32>
    %83 = tpu.matmul %10, %82, %cst_41 {dimension_numbers = #tpu.dot_dimension_numbers<[1], [0], [0], [1], [0, 0, 1, 1], [], []>} : vector<8x32xbf16>, vector<32x128xbf16>, vector<8x128xf32> -> vector<8x128xf32>
    %84 = arith.addf %79, %83 : vector<8x128xf32>
    %c5_42 = arith.constant 5 : index
    %c0_43 = arith.constant 0 : index
    %85 = vector.load %arg3[%c5_42, %c0_43] : memref<10x128xf32, #tpu.memory_space<vmem>>, vector<1x128xf32>
    %86 = vector.shape_cast %85 : vector<1x128xf32> to vector<128xf32>
    %87 = vector.shape_cast %86 : vector<128xf32> to vector<1x128xf32>
    %88 = vector.broadcast %87 : vector<1x128xf32> to vector<8x128xf32>
    %89 = arith.addf %84, %88 : vector<8x128xf32>
    %cst_44 = arith.constant 0.000000e+00 : f32
    %90 = vector.broadcast %cst_44 : f32 to vector<8x128xf32>
    %91 = arith.cmpf ogt, %89, %90 : vector<8x128xf32>
    %cst_45 = arith.constant 0.00999999977 : f32
    %92 = vector.broadcast %cst_45 : f32 to vector<8x128xf32>
    %93 = arith.mulf %92, %89 : vector<8x128xf32>
    %94 = arith.select %91, %89, %93 : vector<8x128xi1>, vector<8x128xf32>
    %95 = arith.truncf %94 : vector<8x128xf32> to vector<8x128xbf16>
    %c6 = arith.constant 6 : index
    %c0_46 = arith.constant 0 : index
    %c0_47 = arith.constant 0 : index
    %96 = vector.load %arg2[%c6, %c0_46, %c0_47] : memref<10x128x128xbf16, #tpu.memory_space<vmem>>, vector<1x128x128xbf16>
    %97 = vector.shape_cast %96 : vector<1x128x128xbf16> to vector<128x128xbf16>
    %cst_48 = arith.constant dense<0.000000e+00> : vector<8x128xf32>
    %98 = tpu.matmul %95, %97, %cst_48 {dimension_numbers = #tpu.dot_dimension_numbers<[1], [0], [0], [1], [0, 0, 1, 1], [], []>} : vector<8x128xbf16>, vector<128x128xbf16>, vector<8x128xf32> -> vector<8x128xf32>
    %c6_49 = arith.constant 6 : index
    %c0_50 = arith.constant 0 : index
    %99 = vector.load %arg3[%c6_49, %c0_50] : memref<10x128xf32, #tpu.memory_space<vmem>>, vector<1x128xf32>
    %100 = vector.shape_cast %99 : vector<1x128xf32> to vector<128xf32>
    %101 = vector.shape_cast %100 : vector<128xf32> to vector<1x128xf32>
    %102 = vector.broadcast %101 : vector<1x128xf32> to vector<8x128xf32>
    %103 = arith.addf %98, %102 : vector<8x128xf32>
    %cst_51 = arith.constant 0.000000e+00 : f32
    %104 = vector.broadcast %cst_51 : f32 to vector<8x128xf32>
    %105 = arith.cmpf ogt, %103, %104 : vector<8x128xf32>
    %cst_52 = arith.constant 0.00999999977 : f32
    %106 = vector.broadcast %cst_52 : f32 to vector<8x128xf32>
    %107 = arith.mulf %106, %103 : vector<8x128xf32>
    %108 = arith.select %105, %103, %107 : vector<8x128xi1>, vector<8x128xf32>
    %109 = arith.truncf %108 : vector<8x128xf32> to vector<8x128xbf16>
    %c7 = arith.constant 7 : index
    %c0_53 = arith.constant 0 : index
    %c0_54 = arith.constant 0 : index
    %110 = vector.load %arg2[%c7, %c0_53, %c0_54] : memref<10x128x128xbf16, #tpu.memory_space<vmem>>, vector<1x128x128xbf16>
    %111 = vector.shape_cast %110 : vector<1x128x128xbf16> to vector<128x128xbf16>
    %cst_55 = arith.constant dense<0.000000e+00> : vector<8x128xf32>
    %112 = tpu.matmul %109, %111, %cst_55 {dimension_numbers = #tpu.dot_dimension_numbers<[1], [0], [0], [1], [0, 0, 1, 1], [], []>} : vector<8x128xbf16>, vector<128x128xbf16>, vector<8x128xf32> -> vector<8x128xf32>
    %c7_56 = arith.constant 7 : index
    %c0_57 = arith.constant 0 : index
    %113 = vector.load %arg3[%c7_56, %c0_57] : memref<10x128xf32, #tpu.memory_space<vmem>>, vector<1x128xf32>
    %114 = vector.shape_cast %113 : vector<1x128xf32> to vector<128xf32>
    %115 = vector.shape_cast %114 : vector<128xf32> to vector<1x128xf32>
    %116 = vector.broadcast %115 : vector<1x128xf32> to vector<8x128xf32>
    %117 = arith.addf %112, %116 : vector<8x128xf32>
    %cst_58 = arith.constant 0.000000e+00 : f32
    %118 = vector.broadcast %cst_58 : f32 to vector<8x128xf32>
    %119 = arith.cmpf ogt, %117, %118 : vector<8x128xf32>
    %cst_59 = arith.constant 0.00999999977 : f32
    %120 = vector.broadcast %cst_59 : f32 to vector<8x128xf32>
    %121 = arith.mulf %120, %117 : vector<8x128xf32>
    %122 = arith.select %119, %117, %121 : vector<8x128xi1>, vector<8x128xf32>
    %123 = arith.truncf %122 : vector<8x128xf32> to vector<8x128xbf16>
    %c8 = arith.constant 8 : index
    %c0_60 = arith.constant 0 : index
    %c0_61 = arith.constant 0 : index
    %124 = vector.load %arg2[%c8, %c0_60, %c0_61] : memref<10x128x128xbf16, #tpu.memory_space<vmem>>, vector<1x128x128xbf16>
    %125 = vector.shape_cast %124 : vector<1x128x128xbf16> to vector<128x128xbf16>
    %cst_62 = arith.constant dense<0.000000e+00> : vector<8x128xf32>
    %126 = tpu.matmul %123, %125, %cst_62 {dimension_numbers = #tpu.dot_dimension_numbers<[1], [0], [0], [1], [0, 0, 1, 1], [], []>} : vector<8x128xbf16>, vector<128x128xbf16>, vector<8x128xf32> -> vector<8x128xf32>
    %c8_63 = arith.constant 8 : index
    %c0_64 = arith.constant 0 : index
    %127 = vector.load %arg3[%c8_63, %c0_64] : memref<10x128xf32, #tpu.memory_space<vmem>>, vector<1x128xf32>
    %128 = vector.shape_cast %127 : vector<1x128xf32> to vector<128xf32>
    %129 = vector.shape_cast %128 : vector<128xf32> to vector<1x128xf32>
    %130 = vector.broadcast %129 : vector<1x128xf32> to vector<8x128xf32>
    %131 = arith.addf %126, %130 : vector<8x128xf32>
    %cst_65 = arith.constant 0.000000e+00 : f32
    %132 = vector.broadcast %cst_65 : f32 to vector<8x128xf32>
    %133 = arith.cmpf ogt, %131, %132 : vector<8x128xf32>
    %cst_66 = arith.constant 0.00999999977 : f32
    %134 = vector.broadcast %cst_66 : f32 to vector<8x128xf32>
    %135 = arith.mulf %134, %131 : vector<8x128xf32>
    %136 = arith.select %133, %131, %135 : vector<8x128xi1>, vector<8x128xf32>
    %137 = arith.truncf %136 : vector<8x128xf32> to vector<8x128xbf16>
    %c9 = arith.constant 9 : index
    %c0_67 = arith.constant 0 : index
    %c0_68 = arith.constant 0 : index
    %138 = vector.load %arg2[%c9, %c0_67, %c0_68] : memref<10x128x128xbf16, #tpu.memory_space<vmem>>, vector<1x128x128xbf16>
    %139 = vector.shape_cast %138 : vector<1x128x128xbf16> to vector<128x128xbf16>
    %cst_69 = arith.constant dense<0.000000e+00> : vector<8x128xf32>
    %140 = tpu.matmul %137, %139, %cst_69 {dimension_numbers = #tpu.dot_dimension_numbers<[1], [0], [0], [1], [0, 0, 1, 1], [], []>} : vector<8x128xbf16>, vector<128x128xbf16>, vector<8x128xf32> -> vector<8x128xf32>
    %c9_70 = arith.constant 9 : index
    %c0_71 = arith.constant 0 : index
    %141 = vector.load %arg3[%c9_70, %c0_71] : memref<10x128xf32, #tpu.memory_space<vmem>>, vector<1x128xf32>
    %142 = vector.shape_cast %141 : vector<1x128xf32> to vector<128xf32>
    %143 = vector.shape_cast %142 : vector<128xf32> to vector<1x128xf32>
    %144 = vector.broadcast %143 : vector<1x128xf32> to vector<8x128xf32>
    %145 = arith.addf %140, %144 : vector<8x128xf32>
    %146 = vector.extract_strided_slice %145 {offsets = [0, 0], sizes = [8, 16], strides = [1, 1]} : vector<8x128xf32> to vector<8x16xf32>
    %c0_72 = arith.constant 0 : index
    %c0_73 = arith.constant 0 : index
    %147 = vector.load %arg4[%c0_72, %c0_73] : memref<8x16xf32, #tpu.memory_space<vmem>>, vector<8x16xf32>
    tpu.vector_store %arg4[%c0_72, %c0_73], %146 {strides = array<i32>} : memref<8x16xf32, #tpu.memory_space<vmem>>, vector<8x16xf32>,
    return
  }
  func.func @transform_0(%arg0: i32) -> (i32, i32) {
    %c0_i32 = arith.constant 0 : i32
    %c0_i32_0 = arith.constant 0 : i32
    return %arg0, %c0_i32 : i32, i32
  }
  func.func @transform_1(%arg0: i32) -> (i32, i32, i32) {
    %c0_i32 = arith.constant 0 : i32
    %c0_i32_0 = arith.constant 0 : i32
    %c0_i32_1 = arith.constant 0 : i32
    %c0_i32_2 = arith.constant 0 : i32
    return %c0_i32, %c0_i32_0, %c0_i32_1 : i32, i32, i32
  }
  func.func @transform_2(%arg0: i32) -> (i32, i32) {
    %c0_i32 = arith.constant 0 : i32
    %c0_i32_0 = arith.constant 0 : i32
    %c0_i32_1 = arith.constant 0 : i32
    return %c0_i32, %c0_i32_0 : i32, i32
  }
  func.func @transform_3(%arg0: i32) -> (i32, i32) {
    %c0_i32 = arith.constant 0 : i32
    %c0_i32_0 = arith.constant 0 : i32
    return %arg0, %c0_i32 : i32, i32
  }
}

</mosaic_0001>

<bundles_post_ra>
// kernel: rnd_forward.1
= control target key start
LH: loop header
LB: loop body
LE: loop exit
PB: predicated region body
PF: predicated region fallthrough
CT: control target
= control target key end

     0   :  { %8 = vsyncpa [#allocation3], 0  ;;  %s1373_s0 = inlined_call_operand.vmem [shape: f32[8,32], index: 0, kind: input, shape index: {}]   ;;  %s1374_s1 = inlined_call_operand.hbm [shape: bf16[10,128,128], index: 1, kind: input, shape index: {}]   ;;  %s1375_s2 = inlined_call_operand.vmem [shape: f32[10,128], index: 2, kind: input, shape index: {}]   ;;  %s1376_s3 = inlined_call_operand.hbm [shape: f32[8,16], index: 3, kind: output, shape index: {}]  }
   0x1   :  { %9 = vsyncpa [#allocation4], 0  ;;  %s16_s14 = sshll.u32 %s1374_s1, 4  ;;  %s1303_s15 = smov [#allocation2]   ;;  %s17_s14 = int_to_ptr.hbm [resolvable:$true] %s16_s14 }
   0x2   :  { %s18_s16 = sshll.u32 %s1303_s15, 4  ;;  %s1304_s17 = smov 64   ;;  %s19_s16 = int_to_ptr.vmem [resolvable:$true] %s18_s16 }
   0x3   :  { %s1305_s18 = smov 4  }
   0x4   :  { %24 = dma.hbm_to_vmem [thread:$0]  %s17_s14, 10240, %s19_s16, [#allocation3], %s1304_s17, %s1304_s17, %s1305_s18  }
   0x5   :  { %1299 = dma.done.wait [#allocation3], 10240  }
   0x6   :  { %1300 = vsyncadd [#allocation3], 4294957056  ;;  %v1164_v0 = vld [vmem:[#allocation2 + $0x8] sm:$0xff]  ;;  %v1172_v1 = vld [vmem:[#allocation2 + $0x78] sm:$0xff]  ;;  %vm59_vm0 = vcmask 261120   ;;  %s1306_s12 = smov [#allocation5]  }
   0x7   :  { %69 = vmatpush.bf16.msra.mxu0 %v1164_v0  ;;  %v1163_v2 = vld [vmem:[#allocation2] sm:$0xff]  ;;  %147 = vmatpush.bf16.msra.mxu1 %v1172_v1  ;;  %v1171_v4 = vld [vmem:[#allocation2 + $0x70] sm:$0xff]  ;;  %v1170_v6 = vld [vmem:[#allocation2 + $0x68] sm:$0xff]  ;;  %s853_s13 = sshll.u32 %s1306_s12, 4  ;;  %s855_s16 = sshll.u32 %s1376_s3, 4  ;;  %vm846_vm12 = vcmask 130048   ;;  %s854_s13 = int_to_ptr.vmem [resolvable:$true] %s853_s13  ;;  %s856_s16 = int_to_ptr.hbm [resolvable:$true] %s855_s16 }
   0x8   :  { %v1333_v3 = vld [vmem:[%s1373_s0] sm:$0xff]  ;;  %v1168_v8 = vld [vmem:[#allocation2 + $0x58] sm:$0xff]  ;;  %v1167_v9 = vld [vmem:[#allocation2 + $0x50] sm:$0xff] }
   0x9   :  { %v33_v5 = vpack.c.bf16 %v1333_v3, %v1333_v3  ;;  %v1169_v7 = vld [vmem:[#allocation2 + $0x60] sm:$0xff]  ;;  %v1166_v10 = vld [vmem:[#allocation2 + $0x48] sm:$0xff]  ;;  %v1180_v12 = vld [vmem:[#allocation2 + $0xb8] sm:$0xff] }
   0xa   :  { %v1165_v11 = vld [vmem:[#allocation2 + $0x40] sm:$0xff]  ;;  %231 = vmatpush.bf16.msra.mxu2 %v1180_v12  ;;  %v1179_v13 = vld [vmem:[#allocation2 + $0xb0] sm:$0xff]  ;;  %v1178_v14 = vld [vmem:[#allocation2 + $0xa8] sm:$0xff] }
   0xb   :  { %70 = vmatpush.bf16.msra.mxu0 %v1163_v2  ;;  %148 = vmatpush.bf16.msra.mxu1 %v1171_v4  ;;  %v1177_v15 = vld [vmem:[#allocation2 + $0xa0] sm:$0xff]  ;;  %v1176_v16 = vld [vmem:[#allocation2 + $0x98] sm:$0xff]  ;;  %v1175_v17 = vld [vmem:[#allocation2 + $0x90] sm:$0xff] }
   0xc   :  { %v1241_v18 = vld [vmem:[%s1375_s2] ss:$0 sm:$0xff]  ;;  %v1174_v25 = vld [vmem:[#allocation2 + $0x88] sm:$0xff]  ;;  %v1188_v27 = vld [vmem:[#allocation2 + $0xf8] sm:$0xff] }
   0xd   :  { %v1173_v26 = vld [vmem:[#allocation2 + $0x80] sm:$0xff]  ;;  %315 = vmatpush.bf16.msra.mxu3 %v1188_v27  ;;  %v1187_v28 = vld [vmem:[#allocation2 + $0xf0] sm:$0xff]  ;;  %v1186_v29 = vld [vmem:[#allocation2 + $0xe8] sm:$0xff] }
   0xe   :  { %873 = vmatmul.msk.bf16.vlgmr.msra.gmra.mxu0 %vm59_vm0, %v33_v5  ;;  %232 = vmatpush.bf16.msra.mxu2 %v1179_v13  ;;  %v1185_v30 = vld [vmem:[#allocation2 + $0xe0] sm:$0xff]  ;;  %v1184_v31 = vld [vmem:[#allocation2 + $0xd8] sm:$0xff]  ;;  %v1183_v32 = vld [vmem:[#allocation2 + $0xd0] sm:$0xff] }
   0xf   :  { %149 = vmatpush.bf16.msra.mxu1 %v1170_v6  ;;  %v1242_v33 = vld [vmem:[%s1375_s2 + $0x1] ss:$0 sm:$0xff]  ;;  %v1182_v40 = vld [vmem:[#allocation2 + $0xc8] sm:$0xff]  ;;  %v1196_v42 = vld [vmem:[#allocation2 + $0x138] sm:$0xff] }
  0x10   :  { %v1181_v41 = vld [vmem:[#allocation2 + $0xc0] sm:$0xff]  ;;  %399 = vmatpush.bf16.msrb.mxu0 %v1196_v42  ;;  %v1195_v43 = vld [vmem:[#allocation2 + $0x130] sm:$0xff]  ;;  %v1194_v44 = vld [vmem:[#allocation2 + $0x128] sm:$0xff] }
  0x11   :  { %316 = vmatpush.bf16.msra.mxu3 %v1187_v28  ;;  %v1193_v45 = vld [vmem:[#allocation2 + $0x120] sm:$0xff]  ;;  %v1192_v46 = vld [vmem:[#allocation2 + $0x118] sm:$0xff]  ;;  %v1191_v47 = vld [vmem:[#allocation2 + $0x110] sm:$0xff] }
  0x12   :  { %233 = vmatpush.bf16.msra.mxu2 %v1178_v14  ;;  %v1243_v48 = vld [vmem:[%s1375_s2 + $0x2] ss:$0 sm:$0xff]  ;;  %v1190_v55 = vld [vmem:[#allocation2 + $0x108] sm:$0xff]  ;;  %v1204_v57 = vld [vmem:[#allocation2 + $0x178] sm:$0xff] }
  0x13   :  { %150 = vmatpush.bf16.msra.mxu1 %v1169_v7  ;;  %v1189_v56 = vld [vmem:[#allocation2 + $0x100] sm:$0xff]  ;;  %v1203_v58 = vld [vmem:[#allocation2 + $0x170] sm:$0xff]  ;;  %v1198_v59 = vld [vmem:[#allocation2 + $0x148] sm:$0xff] }
  0x14   :  { %400 = vmatpush.bf16.msrb.mxu0 %v1195_v43  ;;  %v1202_v60 = vld [vmem:[#allocation2 + $0x168] sm:$0xff]  ;;  %v1201_v61 = vld [vmem:[#allocation2 + $0x160] sm:$0xff]  ;;  %v1200_v62 = vld [vmem:[#allocation2 + $0x158] sm:$0xff] }
  0x15   :  { %317 = vmatpush.bf16.msra.mxu3 %v1186_v29  ;;  %v1199_v63 = vld [vmem:[#allocation2 + $0x150] sm:$0xff]  ;;  %v1244_v0 = vld [vmem:[%s1375_s2 + $0x3] ss:$0 sm:$0xff]  ;;  %v1212_v13 = vld [vmem:[#allocation2 + $0x1b8] sm:$0xff] }
  0x16   :  { %234 = vmatpush.bf16.msra.mxu2 %v1177_v15  ;;  %v1211_v14 = vld [vmem:[#allocation2 + $0x1b0] sm:$0xff]  ;;  %v1210_v15 = vld [vmem:[#allocation2 + $0x1a8] sm:$0xff]  ;;  %v1220_v27 = vld [vmem:[#allocation2 + $0x1f8] sm:$0xff] }
  0x17   :  { %151 = vmatpush.bf16.msra.mxu1 %v1168_v8  ;;  %v34_v8 = vlaneseq  ;;  %v1219_v28 = vld [vmem:[#allocation2 + $0x1f0] sm:$0xff]  ;;  %v1218_v29 = vld [vmem:[#allocation2 + $0x1e8] sm:$0xff]  ;;  %v1213_v42 = vld [vmem:[#allocation2 + $0x1c0] sm:$0xff] }
  0x18   :  { %401 = vmatpush.bf16.msrb.mxu0 %v1194_v44  ;;  %v1228_v43 = vld [vmem:[#allocation2 + $0x238] sm:$0xff]  ;;  %v1227_v44 = vld [vmem:[#allocation2 + $0x230] sm:$0xff] }
  0x19   :  { %318 = vmatpush.bf16.msra.mxu3 %v1185_v30  ;;  %v1217_v30 = vld [vmem:[#allocation2 + $0x1e0] sm:$0xff] }
  0x1a   :  { %235 = vmatpush.bf16.msra.mxu2 %v1176_v16  ;;  %v1209_v16 = vld [vmem:[#allocation2 + $0x1a0] sm:$0xff] }
  0x1b   :  { %152 = vmatpush.bf16.msra.mxu1 %v1167_v9  ;;  %v35_v9 = vand.u32 127, %v34_v8  ;;  %v1230_v8 = vld [vmem:[#allocation2 + $0x248] sm:$0xff] }
  0x1c   :  { %402 = vmatpush.bf16.msrb.mxu0 %v1193_v45  ;;  %v1226_v45 = vld [vmem:[#allocation2 + $0x228] sm:$0xff] }
  0x1d   :  { %319 = vmatpush.bf16.msra.mxu3 %v1184_v31  ;;  %vm36_vm5 = vcmp.ge.s32.totalorder %v35_v9, 16  ;;  %vm37_vm6 = vcmp.lt.s32.totalorder %v35_v9, 20  ;;  %v1216_v31 = vld [vmem:[#allocation2 + $0x1d8] sm:$0xff]  ;;  %v1229_v9 = vld [vmem:[#allocation2 + $0x240] sm:$0xff] }
  0x1e   :  { %236 = vmatpush.bf16.msra.mxu2 %v1175_v17  ;;  %vm38_vm7 = vmand %vm36_vm5, %vm37_vm6  ;;  %v1245_v17 = vld [vmem:[%s1375_s2 + $0x4] ss:$0 sm:$0xff] }
  0x1f   :  { %153 = vmatpush.bf16.msra.mxu1 %v1166_v10  ;;  %v39_v10 = vsel %vm38_vm7, %v1333_v3, 0.0 }
  0x20   :  { %403 = vmatpush.bf16.msrb.mxu0 %v1192_v46  ;;  %v40_v12 = vpack.c.bf16 %v39_v10, %v39_v10  ;;  %v1225_v46 = vld [vmem:[#allocation2 + $0x220] sm:$0xff]  ;;  %v1249_v10 = vld [vmem:[%s1375_s2 + $0x8] ss:$0 sm:$0xff] }
  0x21   :  { %320 = vmatpush.bf16.msra.mxu3 %v1183_v32  ;;  %v1215_v32 = vld [vmem:[#allocation2 + $0x1d0] sm:$0xff] }
  0x22   :  { %237 = vmatpush.bf16.msra.mxu2 %v1174_v25  ;;  %v1206_v25 = vld [vmem:[#allocation2 + $0x188] sm:$0xff] }
  0x23   :  { %154 = vmatpush.bf16.msra.mxu1 %v1165_v11  ;;  %v1197_v11 = vld [vmem:[#allocation2 + $0x140] sm:$0xff] }
  0x24   :  { %404 = vmatpush.bf16.msrb.mxu0 %v1191_v47  ;;  %v1224_v47 = vld [vmem:[#allocation2 + $0x218] sm:$0xff] }
  0x25   :  { %321 = vmatpush.bf16.msra.mxu3 %v1182_v40 }
  0x26   :  { %238 = vmatpush.bf16.msra.mxu2 %v1173_v26  ;;  %v1205_v26 = vld [vmem:[#allocation2 + $0x180] sm:$0xff] }
  0x27   :  { %451 = vmatpush.bf16.msrb.mxu1 %v1198_v59 }
  0x28   :  { %405 = vmatpush.bf16.msrb.mxu0 %v1190_v55 }
  0x29   :  { %322 = vmatpush.bf16.msra.mxu3 %v1181_v41  ;;  %v1214_v41 = vld [vmem:[#allocation2 + $0x1c8] sm:$0xff] }
  0x2a   :  { %494 = vmatpush.bf16.msrb.mxu2 %v1204_v57  ;;  %v1221_v57 = vld [vmem:[#allocation2 + $0x200] sm:$0xff] }
  0x2b   :  { %452 = vmatpush.bf16.msrb.mxu1 %v1197_v11 }
  0x2c   :  { %406 = vmatpush.bf16.msrb.mxu0 %v1189_v56  ;;  %v1222_v56 = vld [vmem:[#allocation2 + $0x208] sm:$0xff] }
  0x2d   :  { %581 = vmatpush.bf16.msrb.mxu3 %v1212_v13 }
  0x2e   :  { %495 = vmatpush.bf16.msrb.mxu2 %v1203_v58  ;;  %v1236_v58 = vld [vmem:[#allocation2 + $0x278] sm:$0xff] }
  0x30   :  { %665 = vmatpush.bf16.msra.mxu0 %v1220_v27 }
  0x31   :  { %582 = vmatpush.bf16.msrb.mxu3 %v1211_v14 }
  0x32   :  { %496 = vmatpush.bf16.msrb.mxu2 %v1202_v60  ;;  %v1234_v60 = vld [vmem:[#allocation2 + $0x268] sm:$0xff] }
  0x34   :  { %666 = vmatpush.bf16.msra.mxu0 %v1219_v28 }
  0x35   :  { %583 = vmatpush.bf16.msrb.mxu3 %v1210_v15 }
  0x36   :  { %497 = vmatpush.bf16.msrb.mxu2 %v1201_v61  ;;  %v1233_v61 = vld [vmem:[#allocation2 + $0x260] sm:$0xff] }
  0x38   :  { %667 = vmatpush.bf16.msra.mxu0 %v1218_v29 }
  0x39   :  { %584 = vmatpush.bf16.msrb.mxu3 %v1209_v16 }
  0x3a   :  { %498 = vmatpush.bf16.msrb.mxu2 %v1200_v62  ;;  %v1232_v62 = vld [vmem:[#allocation2 + $0x258] sm:$0xff] }
  0x3c   :  { %668 = vmatpush.bf16.msra.mxu0 %v1217_v30 }
  0x3e   :  { %499 = vmatpush.bf16.msrb.mxu2 %v1199_v63  ;;  %v1231_v63 = vld [vmem:[#allocation2 + $0x250] sm:$0xff] }
  0x40   :  { %669 = vmatpush.bf16.msra.mxu0 %v1216_v31 }
  0x42   :  { %500 = vmatpush.bf16.msrb.mxu2 %v1198_v59  ;;  %v1235_v59 = vld [vmem:[#allocation2 + $0x270] sm:$0xff] }
  0x44   :  { %670 = vmatpush.bf16.msra.mxu0 %v1215_v32 }
  0x46   :  { %501 = vmatpush.bf16.msrb.mxu2 %v1197_v11 }
  0x48   :  { %671 = vmatpush.bf16.msra.mxu0 %v1214_v41 }
  0x4c   :  { %672 = vmatpush.bf16.msra.mxu0 %v1213_v42 }
  0x8b   :  { %v72_v19 = vpop.f32.mrf.mxu0 }
  0x8c   :  { %v73_v20 = vadd.f32 %v1241_v18, %v72_v19 }
  0x8e   :  { %v77_v21 = vmul.f32 0.01, %v73_v20  ;;  %vm76_vm1 = vcmp.gt.f32.partialorder %v73_v20, 0.0 }
  0x90   :  { %v78_v22 = vsel %vm76_vm1, %v73_v20, %v77_v21  ;;  %v1208_v21 = vld [vmem:[#allocation2 + $0x198] sm:$0xff] }
  0x91   :  { %v79_v23 = vpack.c.bf16 %v78_v22, %v78_v22  ;;  %585 = vmatpush.bf16.msrb.mxu3 %v1208_v21  ;;  %v1207_v22 = vld [vmem:[#allocation2 + $0x190] sm:$0xff] }
  0x93   :  { %v74_v24 = vpop.f32.mrf.mxu0  ;;  %155 = vmatmul.bf16.vlgmr.msra.gmra.mxu1 %v79_v23 }
  0x94   :  { %749 = vmatpush.bf16.msra.mxu1 %v1228_v43 }
  0x95   :  { %586 = vmatpush.bf16.msrb.mxu3 %v1207_v22 }
  0x98   :  { %750 = vmatpush.bf16.msra.mxu1 %v1227_v44 }
  0x99   :  { %587 = vmatpush.bf16.msrb.mxu3 %v1206_v25 }
  0x9c   :  { %751 = vmatpush.bf16.msra.mxu1 %v1226_v45 }
  0x9d   :  { %588 = vmatpush.bf16.msrb.mxu3 %v1205_v26 }
  0xa0   :  { %752 = vmatpush.bf16.msra.mxu1 %v1225_v46 }
  0xa3   :  { %1010 = vmatmul.msk.bf16.vlgmr.msrb.gmra.mxu1 %vm59_vm0, %v40_v12 }
  0xa4   :  { %753 = vmatpush.bf16.msra.mxu1 %v1224_v47 }
 0x110   :  { %v156_v34 = vpop.f32.mrf.mxu1 }
 0x111   :  { %v157_v35 = vadd.f32 %v1242_v33, %v156_v34  ;;  %v1246_v33 = vld [vmem:[%s1375_s2 + $0x5] ss:$0 sm:$0xff] }
 0x113   :  { %v161_v36 = vmul.f32 0.01, %v157_v35  ;;  %vm160_vm2 = vcmp.gt.f32.partialorder %v157_v35, 0.0 }
 0x115   :  { %v162_v37 = vsel %vm160_vm2, %v157_v35, %v161_v36 }
 0x116   :  { %v163_v38 = vpack.c.bf16 %v162_v37, %v162_v37 }
 0x118   :  { %v158_v39 = vpop.f32.mrf.mxu1  ;;  %239 = vmatmul.bf16.vlgmr.msra.gmra.mxu2 %v163_v38 }
 0x119   :  { %833 = vmatpush.bf16.msra.mxu2 %v1236_v58 }
 0x11d   :  { %834 = vmatpush.bf16.msra.mxu2 %v1235_v59 }
 0x120   :  { %v454_v23 = vpop.f32.mrf.mxu1 }
 0x121   :  { %835 = vmatpush.bf16.msra.mxu2 %v1234_v60 }
 0x125   :  { %836 = vmatpush.bf16.msra.mxu2 %v1233_v61 }
 0x128   :  { %v456_v24 = vpop.f32.mrf.mxu1 }
 0x129   :  { %837 = vmatpush.bf16.msra.mxu2 %v1232_v62 }
 0x12d   :  { %838 = vmatpush.bf16.msra.mxu2 %v1231_v63 }
 0x131   :  { %839 = vmatpush.bf16.msra.mxu2 %v1230_v8 }
 0x135   :  { %840 = vmatpush.bf16.msra.mxu2 %v1229_v9 }
 0x19b   :  { %v240_v49 = vpop.f32.mrf.mxu2 }
 0x19c   :  { %v241_v50 = vadd.f32 %v1243_v48, %v240_v49  ;;  %v1223_v48 = vld [vmem:[#allocation2 + $0x210] sm:$0xff]  ;;  %v1247_v49 = vld [vmem:[%s1375_s2 + $0x6] ss:$0 sm:$0xff] }
 0x19d   :  { %754 = vmatpush.bf16.msra.mxu1 %v1223_v48 }
 0x19e   :  { %v245_v51 = vmul.f32 0.01, %v241_v50  ;;  %vm244_vm3 = vcmp.gt.f32.partialorder %v241_v50, 0.0 }
 0x1a0   :  { %v246_v52 = vsel %vm244_vm3, %v241_v50, %v245_v51 }
 0x1a1   :  { %v247_v53 = vpack.c.bf16 %v246_v52, %v246_v52  ;;  %755 = vmatpush.bf16.msra.mxu1 %v1222_v56 }
 0x1a3   :  { %v242_v54 = vpop.f32.mrf.mxu2  ;;  %323 = vmatmul.bf16.vlgmr.msra.gmra.mxu3 %v247_v53 }
 0x1a5   :  { %756 = vmatpush.bf16.msra.mxu1 %v1221_v57 }
 0x226   :  { %v324_v1 = vpop.f32.mrf.mxu3 }
 0x227   :  { %v325_v2 = vadd.f32 %v1244_v0, %v324_v1  ;;  %v1248_v0 = vld [vmem:[%s1375_s2 + $0x7] ss:$0 sm:$0xff] }
 0x229   :  { %vm328_vm4 = vcmp.gt.f32.partialorder %v325_v2, 0.0  ;;  %v329_v4 = vmul.f32 0.01, %v325_v2 }
 0x22b   :  { %v330_v5 = vsel %vm328_vm4, %v325_v2, %v329_v4 }
 0x22c   :  { %v331_v6 = vpack.c.bf16 %v330_v5, %v330_v5 }
 0x22e   :  { %v326_v7 = vpop.f32.mrf.mxu3  ;;  %407 = vmatmul.bf16.vlgmr.msrb.gmra.mxu0 %v331_v6 }
 0x2ab   :  { %v408_v18 = vpop.f32.mrf.mxu0 }
 0x2ac   :  { %v409_v3 = vadd.f32 %v1245_v17, %v408_v18  ;;  %v1250_v17 = vld [vmem:[%s1375_s2 + $0x9] ss:$0 sm:$0xff] }
 0x2ae   :  { %v412_v19 = vpack.c.bf16 %v409_v3, %v409_v3 }
 0x2b0   :  { %502 = vmatmul.bf16.vlgmr.msrb.gmra.mxu2 %v412_v19 }
 0x2b3   :  { %v410_v20 = vpop.f32.mrf.mxu0 }
 0x333   :  { %v503_v34 = vpop.f32.mrf.mxu2 }
 0x334   :  { %v504_v35 = vadd.f32 %v503_v34, %v454_v23 }
 0x336   :  { %v509_v36 = vadd.f32 %v1246_v33, %v504_v35 }
 0x338   :  { %v511_v37 = vmul.f32 0.01, %v509_v36  ;;  %vm510_vm8 = vcmp.gt.f32.partialorder %v509_v36, 0.0 }
 0x33a   :  { %v512_v38 = vsel %vm510_vm8, %v509_v36, %v511_v37 }
 0x33b   :  { %v505_v39 = vpop.f32.mrf.mxu2  ;;  %v513_v40 = vpack.c.bf16 %v512_v38, %v512_v38 }
 0x33d   :  { %589 = vmatmul.bf16.vlgmr.msrb.gmra.mxu3 %v513_v40 }
 0x3c0   :  { %v590_v50 = vpop.f32.mrf.mxu3 }
 0x3c1   :  { %v591_v51 = vadd.f32 %v1247_v49, %v590_v50 }
 0x3c3   :  { %vm594_vm9 = vcmp.gt.f32.partialorder %v591_v51, 0.0  ;;  %v595_v52 = vmul.f32 0.01, %v591_v51 }
 0x3c5   :  { %v596_v53 = vsel %vm594_vm9, %v591_v51, %v595_v52 }
 0x3c6   :  { %v597_v54 = vpack.c.bf16 %v596_v53, %v596_v53 }
 0x3c8   :  { %v592_v55 = vpop.f32.mrf.mxu3  ;;  %673 = vmatmul.bf16.vlgmr.msra.gmra.mxu0 %v597_v54 }
 0x445   :  { %v674_v1 = vpop.f32.mrf.mxu0 }
 0x446   :  { %v675_v2 = vadd.f32 %v1248_v0, %v674_v1 }
 0x448   :  { %vm678_vm10 = vcmp.gt.f32.partialorder %v675_v2, 0.0  ;;  %v679_v4 = vmul.f32 0.01, %v675_v2 }
 0x44a   :  { %v680_v5 = vsel %vm678_vm10, %v675_v2, %v679_v4 }
 0x44b   :  { %v681_v6 = vpack.c.bf16 %v680_v5, %v680_v5 }
 0x44d   :  { %v676_v7 = vpop.f32.mrf.mxu0  ;;  %757 = vmatmul.bf16.vlgmr.msra.gmra.mxu1 %v681_v6 }
 0x4ca   :  { %v758_v11 = vpop.f32.mrf.mxu1 }
 0x4cb   :  { %v759_v12 = vadd.f32 %v1249_v10, %v758_v11 }
 0x4cd   :  { %vm762_vm11 = vcmp.gt.f32.partialorder %v759_v12, 0.0  ;;  %v763_v13 = vmul.f32 0.01, %v759_v12 }
 0x4cf   :  { %v764_v14 = vsel %vm762_vm11, %v759_v12, %v763_v13 }
 0x4d0   :  { %v765_v15 = vpack.c.bf16 %v764_v14, %v764_v14 }
 0x4d2   :  { %v760_v16 = vpop.f32.mrf.mxu1  ;;  %841 = vmatmul.bf16.vlgmr.msra.gmra.mxu2 %v765_v15 }
 0x555   :  { %v842_v18 = vpop.f32.mrf.mxu2 }
 0x556   :  { %v843_v3 = vadd.f32 %v1250_v17, %v842_v18 }
 0x558   :  { %847 = vst.msk [vmem:[#allocation5] sm:$0xff] %vm846_vm12, %v843_v3 }
 0x559   :  { %858 = dma.vmem_to_hbm [thread:$0]  %s854_s13, 128, %s856_s16, [#allocation4]  }
 0x55d   :  { %v844_v19 = vpop.f32.mrf.mxu2 }
 0x55e   :  { %1301 = dma.done.wait [#allocation4], 128  }
 0x55f   :  { %1302 = vsyncadd [#allocation4], 4294967168 }
 0x560   :  { %863 = vsyncpa [#allocation3], 1 }
 0x561   :  { %864 = vsyncpa [#allocation4], 1 }

</bundles_post_ra>
